<compile_context>
chip_gen: v7x
topology: tpu7x:2x2x1
jax: 0.10.0
libtpu: 0.0.40
codegen_flags: <defaults>
</compile_context>

<pallas_src>
import functools

import jax
import jax.numpy as jnp
from jax.experimental import pallas as pl
from jax.experimental.pallas import tpu as pltpu

EPS = 1e-12      # module eps for eta normalization
LN_EPS = 1e-5    # torch.nn.LayerNorm default eps


def _round_up(x, m):
    return ((x + m - 1) // m) * m


def ggt_kernel(
    src_ref, dst_ref, e_ref,                 # edge-tiled inputs
    hp_ref, wn_ref, bn_ref,                  # node-resident: cat(h,p), fused weight/bias
    wb3_ref, bb3_ref, lng_ref, lnb_ref,      # B3 weight/bias, LayerNorm gamma/beta
    e_out_ref, hp_out_ref,                   # outputs: relu(hat_eta) tile, packed [h | p]
    node_ref, sumsig_ref, acc_ref,           # VMEM scratch: (N,8D) slab, (N,D), (N,2D)
):
    f32 = jnp.float32
    N = hp_ref.shape[0]
    D = lng_ref.shape[-1]
    te = src_ref.shape[0]

    phase = pl.program_id(0)
    t = pl.program_id(1)
    last = pl.num_programs(1) - 1

    # ---- one-time node-level setup: fused projections -> node slab --------------
    @pl.when((phase == 0) & (t == 0))
    def _init():
        # proj columns: [K | V | B1 | B2 | C1 | C2]  (one (N,2din)x(2din,6D) matmul)
        proj = jnp.dot(hp_ref[...], wn_ref[...], preferred_element_type=f32) + bn_ref[...]
        Kh = proj[:, 0 * D:1 * D]
        Vh = proj[:, 1 * D:2 * D]
        B1h = proj[:, 2 * D:3 * D]
        B2h = proj[:, 3 * D:4 * D]
        C1p = proj[:, 4 * D:5 * D]
        C2p = proj[:, 5 * D:6 * D]
        sigQ = jnp.exp(jnp.tanh(Kh))          # exp(att_act1(Q_h)), Q_h == K_h
        sigK = jnp.exp(jax.nn.sigmoid(Kh))    # exp(att_act2(K_h))
        # slab (256 lanes): [B1 | sigQ | V | C2 | B2 | sigK | inv(=0 for now) | C1]
        node_ref[...] = jnp.concatenate(
            [B1h, sigQ, Vh, C2p, B2h, sigK, jnp.zeros_like(Kh), C1p], axis=-1)
        sumsig_ref[...] = jnp.zeros_like(sumsig_ref)
        acc_ref[...] = jnp.zeros_like(acc_ref)

    # ---- build one-hot gather/scatter tiles in VMEM (no HBM one-hots) -----------
    lane_ids = jax.lax.broadcasted_iota(jnp.int32, (te, N), 1)
    src_oh = (src_ref[...] == lane_ids).astype(f32)     # (te, N); padded edges -> zero row
    dst_oh = (dst_ref[...] == lane_ids).astype(f32)

    # ---- batched gathers: one full-slab (te,N)x(N,8D) matmul per side -----------
    slab = node_ref[...]
    src_g = jnp.dot(src_oh, slab, preferred_element_type=f32)   # (te, 8D)
    dst_g = jnp.dot(dst_oh, slab, preferred_element_type=f32)   # (te, 8D)

    b3e = jnp.dot(e_ref[...], wb3_ref[...], preferred_element_type=f32) + bb3_ref[...]
    hat_eta = src_g[:, 0:D] + dst_g[:, 4 * D:5 * D] + b3e        # B1[src] + B2[dst] + B3(e)
    sigma = jax.nn.sigmoid(hat_eta)

    # written in both phases (same values) so revisited output blocks stay correct
    e_out_ref[...] = jnp.maximum(hat_eta, 0.0)                   # relu (batch_norm=False)

    # ---- phase 0: accumulate sum of sigma over incoming edges of each node ------
    @pl.when(phase == 0)
    def _accum_sigma():
        sumsig_ref[...] += jax.lax.dot_general(
            dst_oh, sigma, (((0,), (0,)), ((), ())), preferred_element_type=f32)

    @pl.when((phase == 0) & (t == last))
    def _write_inv():
        inv = 1.0 / (sumsig_ref[...] + EPS)                      # node-level reciprocal
        cur = node_ref[...]
        node_ref[...] = jnp.concatenate(
            [cur[:, :6 * D], inv, cur[:, 7 * D:]], axis=-1)      # fill slab's inv slot

    # ---- phase 1: eta / alpha and one batched scatter of both messages ----------
    @pl.when(phase == 1)
    def _scatter_messages():
        eta = sigma * dst_g[:, 6 * D:7 * D]                      # sigma * inv[dst]
        alpha = jnp.sum(src_g[:, 1 * D:2 * D] * dst_g[:, 5 * D:6 * D],
                        axis=-1, keepdims=True)                  # <sigQ[src], sigK[dst]>
        msg = jnp.concatenate(
            [eta * alpha * src_g[:, 2 * D:3 * D],                # eta * alpha * V_h[src]
             eta * src_g[:, 3 * D:4 * D]], axis=-1)              # eta * C2_p[src]
        acc_ref[...] += jax.lax.dot_general(
            dst_oh, msg, (((0,), (0,)), ((), ())), preferred_element_type=f32)

    @pl.when((phase == 1) & (t == last))
    def _finalize():
        cur = node_ref[...]
        h_new = jnp.maximum(cur[:, 2 * D:3 * D] + acc_ref[:, 0:D], 0.0)   # relu(V_h + sum)
        mu = jnp.mean(h_new, axis=-1, keepdims=True)
        var = jnp.mean((h_new - mu) ** 2, axis=-1, keepdims=True)
        h_new = (h_new - mu) * jax.lax.rsqrt(var + LN_EPS) * lng_ref[...] + lnb_ref[...]
        p_new = jnp.tanh(cur[:, 7 * D:8 * D] + acc_ref[:, D:2 * D])       # tanh(C1_p + sum)
        hp_out_ref[...] = jnp.concatenate([h_new, p_new], axis=-1)        # packed [h | p]


def make_params(key, din, dout):
    ks = jax.random.split(key, 16)

    def lin_init(kw, kb, fan_in, fan_out):
        bound = 1.0 / jnp.sqrt(jnp.float32(fan_in))
        w = jax.random.uniform(kw, (fan_in, fan_out), jnp.float32, -bound, bound)
        b = jax.random.uniform(kb, (1, fan_out), jnp.float32, -bound, bound)
        return w, b

    params = {}
    params["K"] = lin_init(ks[0], ks[1], 2 * din, dout)
    params["V"] = lin_init(ks[2], ks[3], 2 * din, dout)
    params["B1"] = lin_init(ks[4], ks[5], din, dout)
    params["B2"] = lin_init(ks[6], ks[7], din, dout)
    params["B3"] = lin_init(ks[8], ks[9], din, dout)
    params["C1"] = lin_init(ks[10], ks[11], din, dout)
    params["C2"] = lin_init(ks[12], ks[13], din, dout)
    params["ln_gamma"] = jnp.ones((1, dout), jnp.float32)
    params["ln_beta"] = jnp.zeros((1, dout), jnp.float32)
    return params


@functools.partial(jax.jit, static_argnames=("num_nodes", "edge_tile"))
def ggt_layer(h, e, p, src, dst, params, *, num_nodes, edge_tile=256):
    N, din = h.shape
    E = e.shape[0]
    dout = params["K"][0].shape[1]

    # ---- edge tiling / padding (padded edges use index == N -> all-zero one-hot row)
    te = _round_up(min(int(edge_tile), _round_up(E, 8)), 8)
    E_pad = _round_up(E, te)
    pad = E_pad - E
    e_pad = jnp.pad(e, ((0, pad), (0, 0)))
    src_p = jnp.pad(src.astype(jnp.int32), (0, pad), constant_values=N).reshape(E_pad, 1)
    dst_p = jnp.pad(dst.astype(jnp.int32), (0, pad), constant_values=N).reshape(E_pad, 1)
    n_tiles = E_pad // te

    hp = jnp.concatenate([h, p], axis=-1)

    # ---- fuse the 6 node-side linears into one (2*din, 6*dout) block weight ------
    zeros = jnp.zeros((din, dout), jnp.float32)
    on_h = lambda w: jnp.concatenate([w, zeros], axis=0)   # acts on the h half of cat(h,p)
    on_p = lambda w: jnp.concatenate([zeros, w], axis=0)   # acts on the p half
    wn = jnp.concatenate(
        [params["K"][0], params["V"][0], on_h(params["B1"][0]), on_h(params["B2"][0]),
         on_p(params["C1"][0]), on_p(params["C2"][0])], axis=1)
    bn = jnp.concatenate(
        [params["K"][1], params["V"][1], params["B1"][1], params["B2"][1],
         params["C1"][1], params["C2"][1]], axis=1)

    edge_map = lambda ph, t: (t, 0)
    const_map = lambda ph, t: (0, 0)

    grid_spec = pltpu.PrefetchScalarGridSpec(
        num_scalar_prefetch=0,
        grid=(2, n_tiles),                    # (phase, edge tile); phase 0 = sum_sigma pass
        in_specs=[
            pl.BlockSpec((te, 1), edge_map),              # src indices
            pl.BlockSpec((te, 1), edge_map),              # dst indices
            pl.BlockSpec((te, din), edge_map),            # edge features
            pl.BlockSpec((N, 2 * din), const_map),        # cat(h, p)   (resident)
            pl.BlockSpec((2 * din, 6 * dout), const_map), # fused node weight
            pl.BlockSpec((1, 6 * dout), const_map),       # fused node bias
            pl.BlockSpec((din, dout), const_map),         # B3 weight
            pl.BlockSpec((1, dout), const_map),           # B3 bias
            pl.BlockSpec((1, dout), const_map),           # LN gamma
            pl.BlockSpec((1, dout), const_map),           # LN beta
        ],
        out_specs=[
            pl.BlockSpec((te, dout), edge_map),           # relu(hat_eta)
            pl.BlockSpec((N, 2 * dout), const_map),       # packed [h | p] (written once)
        ],
        scratch_shapes=[
            pltpu.VMEM((N, 8 * dout), jnp.float32),       # node slab
            pltpu.VMEM((N, dout), jnp.float32),           # sum_sigma accumulator
            pltpu.VMEM((N, 2 * dout), jnp.float32),       # [sum_eta_v | sum_eta_p]
        ],
    )

    # rough cost hint for XLA scheduling around the custom call
    gather_flops = 2 * 2 * (2 * E_pad * N * 8 * dout)          # 2 phases x (src+dst) gathers
    scatter_flops = 2 * E_pad * N * 3 * dout                   # phase-0 (D) + phase-1 (2D)
    other_flops = 2 * 2 * E_pad * din * dout + 2 * N * 2 * din * 6 * dout
    cost = pl.CostEstimate(
        flops=gather_flops + scatter_flops + other_flops,
        transcendentals=4 * E_pad * dout + 6 * N * dout,
        bytes_accessed=(2 * E_pad * (din + 2) * 4            # edge inputs, read twice
                        + N * (2 * din + 2 * dout) * 4       # hp + packed output
                        + (2 * din + 1) * 6 * dout * 4       # fused weight/bias
                        + (din + 3) * dout * 4               # B3 + LN params
                        + E_pad * dout * 4),                 # e output
    )

    e_out, hp_out = pl.pallas_call(
        ggt_kernel,
        out_shape=(
            jax.ShapeDtypeStruct((E_pad, dout), jnp.float32),
            jax.ShapeDtypeStruct((N, 2 * dout), jnp.float32),
        ),
        grid_spec=grid_spec,
        compiler_params=pltpu.CompilerParams(
            # both axes carry sequential accumulation into shared VMEM scratch
            dimension_semantics=("arbitrary", "arbitrary"),
        ),
        cost_estimate=cost,
    )(src_p, dst_p, e_pad, hp, wn, bn,
      params["B3"][0], params["B3"][1], params["ln_gamma"], params["ln_beta"])

    return hp_out[:, :dout], e_out[:E], hp_out[:, dout:]


def ggt_layer_ref(h, e, p, src, dst, params, num_nodes):
    """Pure-JAX reference (segment_sum based) mirroring the PyTorch forward."""
    hp = jnp.concatenate([h, p], axis=-1)
    lin = lambda x, wb: x @ wb[0] + wb[1]
    Kh = lin(hp, params["K"])
    Vh = lin(hp, params["V"])
    B1h, B2h = lin(h, params["B1"]), lin(h, params["B2"])
    B3e = lin(e, params["B3"])
    C1p, C2p = lin(p, params["C1"]), lin(p, params["C2"])

    hat_eta = B1h[src] + B2h[dst] + B3e
    sigma = jax.nn.sigmoid(hat_eta)
    sum_sigma = jax.ops.segment_sum(sigma, dst, num_segments=num_nodes)
    eta = sigma / (sum_sigma[dst] + EPS)

    sigmaQ = jnp.exp(jnp.tanh(Kh))
    sigmaK = jnp.exp(jax.nn.sigmoid(Kh))
    alpha = jnp.sum(sigmaQ[src] * sigmaK[dst], axis=-1, keepdims=True)

    h_new = Vh + jax.ops.segment_sum(eta * alpha * Vh[src], dst, num_segments=num_nodes)
    p_new = C1p + jax.ops.segment_sum(eta * C2p[src], dst, num_segments=num_nodes)

    h_new = jax.nn.relu(h_new)
    e_new = jax.nn.relu(hat_eta)
    p_new = jnp.tanh(p_new)

    mu = jnp.mean(h_new, axis=-1, keepdims=True)
    var = jnp.mean((h_new - mu) ** 2, axis=-1, keepdims=True)
    h_new = (h_new - mu) * jax.lax.rsqrt(var + LN_EPS) * params["ln_gamma"] + params["ln_beta"]
    return h_new, e_new, p_new


if __name__ == "__main__":
    N, E, DIN, DOUT = 16, 90, 16, 32   # E=90 exercises the edge-tile padding path

    key = jax.random.PRNGKey(0)
    k_h, k_e, k_p, k_src, k_dst, k_par = jax.random.split(key, 6)

    h = jax.random.normal(k_h, (N, DIN), jnp.float32)
    e = jax.random.normal(k_e, (E, DIN), jnp.float32)
    p = jax.random.normal(k_p, (N, DIN), jnp.float32)
    src = jax.random.randint(k_src, (E,), 0, N, jnp.int32)
    dst = jax.random.randint(k_dst, (E,), 0, N, jnp.int32)
    params = make_params(k_par, DIN, DOUT)

    h_out, e_out, p_out = ggt_layer(h, e, p, src, dst, params, num_nodes=N, edge_tile=32)
    jax.block_until_ready((h_out, e_out, p_out))

    h_ref, e_ref, p_ref = ggt_layer_ref(h, e, p, src, dst, params, N)
    assert h_out.shape == h_ref.shape and e_out.shape == e_ref.shape and p_out.shape == p_ref.shape
    assert jnp.allclose(h_out, h_ref, rtol=1e-4, atol=1e-4), "h mismatch"
    assert jnp.allclose(e_out, e_ref, rtol=1e-4, atol=1e-4), "e mismatch"
    assert jnp.allclose(p_out, p_ref, rtol=1e-4, atol=1e-4), "p mismatch"

    print("KERNEL_OK")
</pallas_src>

<mosaic_0001>
module attributes {stable_mosaic.version = 11 : i64} {
  func.func @ggt_kernel(%arg0: i32, %arg1: i32, %arg2: memref<32x1xi32, #tpu.memory_space<vmem>>, %arg3: memref<32x1xi32, #tpu.memory_space<vmem>>, %arg4: memref<32x16xf32, #tpu.memory_space<vmem>>, %arg5: memref<16x32xf32, #tpu.memory_space<vmem>>, %arg6: memref<32x192xf32, #tpu.memory_space<vmem>>, %arg7: memref<1x192xf32, #tpu.memory_space<vmem>>, %arg8: memref<16x32xf32, #tpu.memory_space<vmem>>, %arg9: memref<1x32xf32, #tpu.memory_space<vmem>>, %arg10: memref<1x32xf32, #tpu.memory_space<vmem>>, %arg11: memref<1x32xf32, #tpu.memory_space<vmem>>, %arg12: memref<32x32xf32, #tpu.memory_space<vmem>>, %arg13: memref<16x64xf32, #tpu.memory_space<vmem>>, %arg14: memref<16x256xf32, #tpu.memory_space<vmem>>, %arg15: memref<16x32xf32, #tpu.memory_space<vmem>>, %arg16: memref<16x64xf32, #tpu.memory_space<vmem>>) attributes {dimension_semantics = [#tpu.dimension_semantics<arbitrary>, #tpu.dimension_semantics<arbitrary>], iteration_bounds = array<i64: 2, 3>, scalar_prefetch = 0 : i64, scratch_operands = 3 : i64, tpu.core_type = #tpu.core_type<tc>, window_params = [{transform_indices = @transform_0, window_bounds = array<i64: 32, 1>}, {transform_indices = @transform_1, window_bounds = array<i64: 32, 1>}, {transform_indices = @transform_2, window_bounds = array<i64: 32, 16>}, {pipeline_mode = #tpu.pipeline_mode<synchronous>, transform_indices = @transform_3, window_bounds = array<i64: 16, 32>}, {pipeline_mode = #tpu.pipeline_mode<synchronous>, transform_indices = @transform_4, window_bounds = array<i64: 32, 192>}, {pipeline_mode = #tpu.pipeline_mode<synchronous>, transform_indices = @transform_5, window_bounds = array<i64: 1, 192>}, {pipeline_mode = #tpu.pipeline_mode<synchronous>, transform_indices = @transform_6, window_bounds = array<i64: 16, 32>}, {pipeline_mode = #tpu.pipeline_mode<synchronous>, transform_indices = @transform_7, window_bounds = array<i64: 1, 32>}, {pipeline_mode = #tpu.pipeline_mode<synchronous>, transform_indices = @transform_8, window_bounds = array<i64: 1, 32>}, {pipeline_mode = #tpu.pipeline_mode<synchronous>, transform_indices = @transform_9, window_bounds = array<i64: 1, 32>}, {transform_indices = @transform_10, window_bounds = array<i64: 32, 32>}, {pipeline_mode = #tpu.pipeline_mode<synchronous>, transform_indices = @transform_11, window_bounds = array<i64: 16, 64>}]} {
    %c0_i32 = arith.constant 0 : i32
    %0 = arith.cmpi eq, %arg0, %c0_i32 : i32
    %c0_i32_0 = arith.constant 0 : i32
    %1 = arith.cmpi eq, %arg1, %c0_i32_0 : i32
    %2 = arith.andi %0, %1 : i1
    %3 = arith.extui %2 : i1 to i32
    %c0_i32_1 = arith.constant 0 : i32
    %4 = arith.cmpi ne, %3, %c0_i32_1 : i32
    scf.if %4 {
      %c0_27 = arith.constant 0 : index
      %c0_28 = arith.constant 0 : index
      %53 = vector.load %arg5[%c0_27, %c0_28] : memref<16x32xf32, #tpu.memory_space<vmem>>, vector<16x32xf32>
      %c0_29 = arith.constant 0 : index
      %c0_30 = arith.constant 0 : index
      %54 = vector.load %arg6[%c0_29, %c0_30] : memref<32x192xf32, #tpu.memory_space<vmem>>, vector<32x192xf32>
      %cst_31 = arith.constant dense<0.000000e+00> : vector<16x192xf32>
      %55 = tpu.matmul %53, %54, %cst_31 {dimension_numbers = #tpu.dot_dimension_numbers<[1], [0], [0], [1], [0, 0, 1, 1], [], []>} : vector<16x32xf32>, vector<32x192xf32>, vector<16x192xf32> -> vector<16x192xf32>
      %c0_32 = arith.constant 0 : index
      %c0_33 = arith.constant 0 : index
      %56 = vector.load %arg7[%c0_32, %c0_33] : memref<1x192xf32, #tpu.memory_space<vmem>>, vector<1x192xf32>
      %57 = vector.broadcast %56 : vector<1x192xf32> to vector<16x192xf32>
      %58 = arith.addf %55, %57 : vector<16x192xf32>
      %59 = vector.extract_strided_slice %58 {offsets = [0, 0], sizes = [16, 32], strides = [1, 1]} : vector<16x192xf32> to vector<16x32xf32>
      %60 = vector.extract_strided_slice %58 {offsets = [0, 32], sizes = [16, 32], strides = [1, 1]} : vector<16x192xf32> to vector<16x32xf32>
      %61 = vector.extract_strided_slice %58 {offsets = [0, 64], sizes = [16, 32], strides = [1, 1]} : vector<16x192xf32> to vector<16x32xf32>
      %62 = vector.extract_strided_slice %58 {offsets = [0, 96], sizes = [16, 32], strides = [1, 1]} : vector<16x192xf32> to vector<16x32xf32>
      %63 = vector.extract_strided_slice %58 {offsets = [0, 128], sizes = [16, 32], strides = [1, 1]} : vector<16x192xf32> to vector<16x32xf32>
      %64 = vector.extract_strided_slice %58 {offsets = [0, 160], sizes = [16, 32], strides = [1, 1]} : vector<16x192xf32> to vector<16x32xf32>
      %65 = math.tanh %59 : vector<16x32xf32>
      %66 = math.exp %65 : vector<16x32xf32>
      %67 = arith.negf %59 : vector<16x32xf32>
      %68 = math.exp %67 : vector<16x32xf32>
      %cst_34 = arith.constant 1.000000e+00 : f32
      %69 = vector.broadcast %cst_34 : f32 to vector<16x32xf32>
      %70 = arith.addf %69, %68 : vector<16x32xf32>
      %71 = arith.divf %69, %70 : vector<16x32xf32>
      %72 = math.exp %71 : vector<16x32xf32>
      %cst_35 = arith.constant 0.000000e+00 : f32
      %73 = vector.broadcast %cst_35 : f32 to vector<16x32xf32>
      %74 = tpu.concatenate %61, %66, %60, %64, %62, %72, %73, %63 in 1 : vector<16x32xf32>, vector<16x32xf32>, vector<16x32xf32>, vector<16x32xf32>, vector<16x32xf32>, vector<16x32xf32>, vector<16x32xf32>, vector<16x32xf32> -> vector<16x256xf32>
      %c0_36 = arith.constant 0 : index
      %c0_37 = arith.constant 0 : index
      %75 = vector.load %arg14[%c0_36, %c0_37] : memref<16x256xf32, #tpu.memory_space<vmem>>, vector<16x256xf32>
      tpu.vector_store %arg14[%c0_36, %c0_37], %74 {strides = array<i32>} : memref<16x256xf32, #tpu.memory_space<vmem>>, vector<16x256xf32>,
      %cst_38 = arith.constant 0.000000e+00 : f32
      %76 = vector.broadcast %cst_38 : f32 to vector<16x32xf32>
      %c0_39 = arith.constant 0 : index
      %c0_40 = arith.constant 0 : index
      %77 = vector.load %arg15[%c0_39, %c0_40] : memref<16x32xf32, #tpu.memory_space<vmem>>, vector<16x32xf32>
      tpu.vector_store %arg15[%c0_39, %c0_40], %76 {strides = array<i32>} : memref<16x32xf32, #tpu.memory_space<vmem>>, vector<16x32xf32>,
      %cst_41 = arith.constant 0.000000e+00 : f32
      %78 = vector.broadcast %cst_41 : f32 to vector<16x64xf32>
      %c0_42 = arith.constant 0 : index
      %c0_43 = arith.constant 0 : index
      %79 = vector.load %arg16[%c0_42, %c0_43] : memref<16x64xf32, #tpu.memory_space<vmem>>, vector<16x64xf32>
      tpu.vector_store %arg16[%c0_42, %c0_43], %78 {strides = array<i32>} : memref<16x64xf32, #tpu.memory_space<vmem>>, vector<16x64xf32>,
    } else {
    }
    %5 = tpu.iota {dimensions = array<i32: 1>} : vector<32x16xi32>
    %c0 = arith.constant 0 : index
    %c0_2 = arith.constant 0 : index
    %6 = vector.load %arg2[%c0, %c0_2] : memref<32x1xi32, #tpu.memory_space<vmem>>, vector<32x1xi32>
    %7 = vector.broadcast %6 : vector<32x1xi32> to vector<32x16xi32>
    %8 = arith.cmpi eq, %7, %5 : vector<32x16xi32>
    %9 = arith.extui %8 : vector<32x16xi1> to vector<32x16xi32>
    %10 = arith.sitofp %9 : vector<32x16xi32> to vector<32x16xf32>
    %c0_3 = arith.constant 0 : index
    %c0_4 = arith.constant 0 : index
    %11 = vector.load %arg3[%c0_3, %c0_4] : memref<32x1xi32, #tpu.memory_space<vmem>>, vector<32x1xi32>
    %12 = vector.broadcast %11 : vector<32x1xi32> to vector<32x16xi32>
    %13 = arith.cmpi eq, %12, %5 : vector<32x16xi32>
    %14 = arith.extui %13 : vector<32x16xi1> to vector<32x16xi32>
    %15 = arith.sitofp %14 : vector<32x16xi32> to vector<32x16xf32>
    %c0_5 = arith.constant 0 : index
    %c0_6 = arith.constant 0 : index
    %16 = vector.load %arg14[%c0_5, %c0_6] : memref<16x256xf32, #tpu.memory_space<vmem>>, vector<16x256xf32>
    %cst = arith.constant dense<0.000000e+00> : vector<32x256xf32>
    %17 = tpu.matmul %10, %16, %cst {dimension_numbers = #tpu.dot_dimension_numbers<[1], [0], [0], [1], [0, 0, 1, 1], [], []>} : vector<32x16xf32>, vector<16x256xf32>, vector<32x256xf32> -> vector<32x256xf32>
    %cst_7 = arith.constant dense<0.000000e+00> : vector<32x256xf32>
    %18 = tpu.matmul %15, %16, %cst_7 {dimension_numbers = #tpu.dot_dimension_numbers<[1], [0], [0], [1], [0, 0, 1, 1], [], []>} : vector<32x16xf32>, vector<16x256xf32>, vector<32x256xf32> -> vector<32x256xf32>
    %c0_8 = arith.constant 0 : index
    %c0_9 = arith.constant 0 : index
    %19 = vector.load %arg4[%c0_8, %c0_9] : memref<32x16xf32, #tpu.memory_space<vmem>>, vector<32x16xf32>
    %c0_10 = arith.constant 0 : index
    %c0_11 = arith.constant 0 : index
    %20 = vector.load %arg8[%c0_10, %c0_11] : memref<16x32xf32, #tpu.memory_space<vmem>>, vector<16x32xf32>
    %cst_12 = arith.constant dense<0.000000e+00> : vector<32x32xf32>
    %21 = tpu.matmul %19, %20, %cst_12 {dimension_numbers = #tpu.dot_dimension_numbers<[1], [0], [0], [1], [0, 0, 1, 1], [], []>} : vector<32x16xf32>, vector<16x32xf32>, vector<32x32xf32> -> vector<32x32xf32>
    %c0_13 = arith.constant 0 : index
    %c0_14 = arith.constant 0 : index
    %22 = vector.load %arg9[%c0_13, %c0_14] : memref<1x32xf32, #tpu.memory_space<vmem>>, vector<1x32xf32>
    %23 = vector.broadcast %22 : vector<1x32xf32> to vector<32x32xf32>
    %24 = arith.addf %21, %23 : vector<32x32xf32>
    %25 = vector.extract_strided_slice %17 {offsets = [0, 0], sizes = [32, 32], strides = [1, 1]} : vector<32x256xf32> to vector<32x32xf32>
    %26 = vector.extract_strided_slice %18 {offsets = [0, 128], sizes = [32, 32], strides = [1, 1]} : vector<32x256xf32> to vector<32x32xf32>
    %27 = arith.addf %25, %26 : vector<32x32xf32>
    %28 = arith.addf %27, %24 : vector<32x32xf32>
    %29 = arith.negf %28 : vector<32x32xf32>
    %30 = math.exp %29 : vector<32x32xf32>
    %cst_15 = arith.constant 1.000000e+00 : f32
    %31 = vector.broadcast %cst_15 : f32 to vector<32x32xf32>
    %32 = arith.addf %31, %30 : vector<32x32xf32>
    %33 = arith.divf %31, %32 : vector<32x32xf32>
    %cst_16 = arith.constant 0.000000e+00 : f32
    %34 = vector.broadcast %cst_16 : f32 to vector<32x32xf32>
    %35 = arith.maximumf %28, %34 : vector<32x32xf32>
    %c0_17 = arith.constant 0 : index
    %c0_18 = arith.constant 0 : index
    %36 = vector.load %arg12[%c0_17, %c0_18] : memref<32x32xf32, #tpu.memory_space<vmem>>, vector<32x32xf32>
    tpu.vector_store %arg12[%c0_17, %c0_18], %35 {strides = array<i32>} : memref<32x32xf32, #tpu.memory_space<vmem>>, vector<32x32xf32>,
    %c0_i32_19 = arith.constant 0 : i32
    %37 = arith.cmpi eq, %arg0, %c0_i32_19 : i32
    %38 = arith.extui %37 : i1 to i32
    %c0_i32_20 = arith.constant 0 : i32
    %39 = arith.cmpi ne, %38, %c0_i32_20 : i32
    scf.if %39 {
      %c0_27 = arith.constant 0 : index
      %c0_28 = arith.constant 0 : index
      %53 = vector.load %arg15[%c0_27, %c0_28] : memref<16x32xf32, #tpu.memory_space<vmem>>, vector<16x32xf32>
      %cst_29 = arith.constant dense<0.000000e+00> : vector<16x32xf32>
      %54 = tpu.matmul %15, %33, %cst_29 {dimension_numbers = #tpu.dot_dimension_numbers<[0], [0], [1], [1], [0, 1, 1, 1], [], []>} : vector<32x16xf32>, vector<32x32xf32>, vector<16x32xf32> -> vector<16x32xf32>
      %55 = arith.addf %53, %54 : vector<16x32xf32>
      %c0_30 = arith.constant 0 : index
      %c0_31 = arith.constant 0 : index
      %56 = vector.load %arg15[%c0_30, %c0_31] : memref<16x32xf32, #tpu.memory_space<vmem>>, vector<16x32xf32>
      tpu.vector_store %arg15[%c0_30, %c0_31], %55 {strides = array<i32>} : memref<16x32xf32, #tpu.memory_space<vmem>>, vector<16x32xf32>,
    } else {
    }
    %c0_i32_21 = arith.constant 0 : i32
    %40 = arith.cmpi eq, %arg0, %c0_i32_21 : i32
    %c2_i32 = arith.constant 2 : i32
    %41 = arith.cmpi eq, %arg1, %c2_i32 : i32
    %42 = arith.andi %40, %41 : i1
    %43 = arith.extui %42 : i1 to i32
    %c0_i32_22 = arith.constant 0 : i32
    %44 = arith.cmpi ne, %43, %c0_i32_22 : i32
    scf.if %44 {
      %c0_27 = arith.constant 0 : index
      %c0_28 = arith.constant 0 : index
      %53 = vector.load %arg15[%c0_27, %c0_28] : memref<16x32xf32, #tpu.memory_space<vmem>>, vector<16x32xf32>
      %cst_29 = arith.constant 9.99999996E-13 : f32
      %54 = vector.broadcast %cst_29 : f32 to vector<16x32xf32>
      %55 = arith.addf %53, %54 : vector<16x32xf32>
      %cst_30 = arith.constant 1.000000e+00 : f32
      %56 = vector.broadcast %cst_30 : f32 to vector<16x32xf32>
      %57 = arith.divf %56, %55 : vector<16x32xf32>
      %c0_31 = arith.constant 0 : index
      %c0_32 = arith.constant 0 : index
      %58 = vector.load %arg14[%c0_31, %c0_32] : memref<16x256xf32, #tpu.memory_space<vmem>>, vector<16x256xf32>
      %59 = vector.extract_strided_slice %58 {offsets = [0, 0], sizes = [16, 192], strides = [1, 1]} : vector<16x256xf32> to vector<16x192xf32>
      %60 = vector.extract_strided_slice %58 {offsets = [0, 224], sizes = [16, 32], strides = [1, 1]} : vector<16x256xf32> to vector<16x32xf32>
      %61 = tpu.concatenate %59, %57, %60 in 1 : vector<16x192xf32>, vector<16x32xf32>, vector<16x32xf32> -> vector<16x256xf32>
      %c0_33 = arith.constant 0 : index
      %c0_34 = arith.constant 0 : index
      %62 = vector.load %arg14[%c0_33, %c0_34] : memref<16x256xf32, #tpu.memory_space<vmem>>, vector<16x256xf32>
      tpu.vector_store %arg14[%c0_33, %c0_34], %61 {strides = array<i32>} : memref<16x256xf32, #tpu.memory_space<vmem>>, vector<16x256xf32>,
    } else {
    }
    %c1_i32 = arith.constant 1 : i32
    %45 = arith.cmpi eq, %arg0, %c1_i32 : i32
    %46 = arith.extui %45 : i1 to i32
    %c0_i32_23 = arith.constant 0 : i32
    %47 = arith.cmpi ne, %46, %c0_i32_23 : i32
    scf.if %47 {
      %53 = vector.extract_strided_slice %18 {offsets = [0, 192], sizes = [32, 32], strides = [1, 1]} : vector<32x256xf32> to vector<32x32xf32>
      %54 = arith.mulf %33, %53 : vector<32x32xf32>
      %55 = vector.extract_strided_slice %17 {offsets = [0, 32], sizes = [32, 32], strides = [1, 1]} : vector<32x256xf32> to vector<32x32xf32>
      %56 = vector.extract_strided_slice %18 {offsets = [0, 160], sizes = [32, 32], strides = [1, 1]} : vector<32x256xf32> to vector<32x32xf32>
      %57 = arith.mulf %55, %56 : vector<32x32xf32>
      %cst_27 = arith.constant dense<0.000000e+00> : vector<32xf32>
      %58 = vector.multi_reduction <add>, %57, %cst_27 [1] : vector<32x32xf32> to vector<32xf32>
      %59 = vector.shape_cast %58 : vector<32xf32> to vector<32x1xf32>
      %60 = vector.broadcast %59 : vector<32x1xf32> to vector<32x32xf32>
      %61 = arith.mulf %54, %60 : vector<32x32xf32>
      %62 = vector.extract_strided_slice %17 {offsets = [0, 64], sizes = [32, 32], strides = [1, 1]} : vector<32x256xf32> to vector<32x32xf32>
      %63 = arith.mulf %61, %62 : vector<32x32xf32>
      %64 = vector.extract_strided_slice %17 {offsets = [0, 96], sizes = [32, 32], strides = [1, 1]} : vector<32x256xf32> to vector<32x32xf32>
      %65 = arith.mulf %54, %64 : vector<32x32xf32>
      %66 = tpu.concatenate %63, %65 in 1 : vector<32x32xf32>, vector<32x32xf32> -> vector<32x64xf32>
      %c0_28 = arith.constant 0 : index
      %c0_29 = arith.constant 0 : index
      %67 = vector.load %arg16[%c0_28, %c0_29] : memref<16x64xf32, #tpu.memory_space<vmem>>, vector<16x64xf32>
      %cst_30 = arith.constant dense<0.000000e+00> : vector<16x64xf32>
      %68 = tpu.matmul %15, %66, %cst_30 {dimension_numbers = #tpu.dot_dimension_numbers<[0], [0], [1], [1], [0, 1, 1, 1], [], []>} : vector<32x16xf32>, vector<32x64xf32>, vector<16x64xf32> -> vector<16x64xf32>
      %69 = arith.addf %67, %68 : vector<16x64xf32>
      %c0_31 = arith.constant 0 : index
      %c0_32 = arith.constant 0 : index
      %70 = vector.load %arg16[%c0_31, %c0_32] : memref<16x64xf32, #tpu.memory_space<vmem>>, vector<16x64xf32>
      tpu.vector_store %arg16[%c0_31, %c0_32], %69 {strides = array<i32>} : memref<16x64xf32, #tpu.memory_space<vmem>>, vector<16x64xf32>,
    } else {
    }
    %c1_i32_24 = arith.constant 1 : i32
    %48 = arith.cmpi eq, %arg0, %c1_i32_24 : i32
    %c2_i32_25 = arith.constant 2 : i32
    %49 = arith.cmpi eq, %arg1, %c2_i32_25 : i32
    %50 = arith.andi %48, %49 : i1
    %51 = arith.extui %50 : i1 to i32
    %c0_i32_26 = arith.constant 0 : i32
    %52 = arith.cmpi ne, %51, %c0_i32_26 : i32
    scf.if %52 {
      %c0_27 = arith.constant 0 : index
      %c0_28 = arith.constant 0 : index
      %53 = vector.load %arg14[%c0_27, %c0_28] : memref<16x256xf32, #tpu.memory_space<vmem>>, vector<16x256xf32>
      %54 = vector.extract_strided_slice %53 {offsets = [0, 64], sizes = [16, 32], strides = [1, 1]} : vector<16x256xf32> to vector<16x32xf32>
      %c0_29 = arith.constant 0 : index
      %c0_30 = arith.constant 0 : index
      %55 = vector.load %arg16[%c0_29, %c0_30] : memref<16x64xf32, #tpu.memory_space<vmem>>, vector<16x32xf32>
      %56 = arith.addf %54, %55 : vector<16x32xf32>
      %cst_31 = arith.constant 0.000000e+00 : f32
      %57 = vector.broadcast %cst_31 : f32 to vector<16x32xf32>
      %58 = arith.maximumf %56, %57 : vector<16x32xf32>
      %cst_32 = arith.constant dense<0.000000e+00> : vector<16xf32>
      %59 = vector.multi_reduction <add>, %58, %cst_32 [1] : vector<16x32xf32> to vector<16xf32>
      %60 = vector.shape_cast %59 : vector<16xf32> to vector<16x1xf32>
      %cst_33 = arith.constant 3.200000e+01 : f32
      %61 = vector.broadcast %cst_33 : f32 to vector<16x1xf32>
      %62 = arith.divf %60, %61 : vector<16x1xf32>
      %63 = vector.broadcast %62 : vector<16x1xf32> to vector<16x32xf32>
      %64 = arith.subf %58, %63 : vector<16x32xf32>
      %65 = arith.mulf %64, %64 : vector<16x32xf32>
      %cst_34 = arith.constant dense<0.000000e+00> : vector<16xf32>
      %66 = vector.multi_reduction <add>, %65, %cst_34 [1] : vector<16x32xf32> to vector<16xf32>
      %67 = vector.shape_cast %66 : vector<16xf32> to vector<16x1xf32>
      %cst_35 = arith.constant 3.200000e+01 : f32
      %68 = vector.broadcast %cst_35 : f32 to vector<16x1xf32>
      %69 = arith.divf %67, %68 : vector<16x1xf32>
      %70 = vector.broadcast %62 : vector<16x1xf32> to vector<16x32xf32>
      %71 = arith.subf %58, %70 : vector<16x32xf32>
      %cst_36 = arith.constant 9.99999974E-6 : f32
      %72 = vector.broadcast %cst_36 : f32 to vector<16x1xf32>
      %73 = arith.addf %69, %72 : vector<16x1xf32>
      %74 = math.rsqrt %73 : vector<16x1xf32>
      %75 = vector.broadcast %74 : vector<16x1xf32> to vector<16x32xf32>
      %76 = arith.mulf %71, %75 : vector<16x32xf32>
      %c0_37 = arith.constant 0 : index
      %c0_38 = arith.constant 0 : index
      %77 = vector.load %arg10[%c0_37, %c0_38] : memref<1x32xf32, #tpu.memory_space<vmem>>, vector<1x32xf32>
      %78 = vector.broadcast %77 : vector<1x32xf32> to vector<16x32xf32>
      %79 = arith.mulf %76, %78 : vector<16x32xf32>
      %c0_39 = arith.constant 0 : index
      %c0_40 = arith.constant 0 : index
      %80 = vector.load %arg11[%c0_39, %c0_40] : memref<1x32xf32, #tpu.memory_space<vmem>>, vector<1x32xf32>
      %81 = vector.broadcast %80 : vector<1x32xf32> to vector<16x32xf32>
      %82 = arith.addf %79, %81 : vector<16x32xf32>
      %83 = vector.extract_strided_slice %53 {offsets = [0, 224], sizes = [16, 32], strides = [1, 1]} : vector<16x256xf32> to vector<16x32xf32>
      %c0_41 = arith.constant 0 : index
      %c32 = arith.constant 32 : index
      %84 = vector.load %arg16[%c0_41, %c32] : memref<16x64xf32, #tpu.memory_space<vmem>>, vector<16x32xf32>
      %85 = arith.addf %83, %84 : vector<16x32xf32>
      %86 = math.tanh %85 : vector<16x32xf32>
      %87 = tpu.concatenate %82, %86 in 1 : vector<16x32xf32>, vector<16x32xf32> -> vector<16x64xf32>
      %c0_42 = arith.constant 0 : index
      %c0_43 = arith.constant 0 : index
      %88 = vector.load %arg13[%c0_42, %c0_43] : memref<16x64xf32, #tpu.memory_space<vmem>>, vector<16x64xf32>
      tpu.vector_store %arg13[%c0_42, %c0_43], %87 {strides = array<i32>} : memref<16x64xf32, #tpu.memory_space<vmem>>, vector<16x64xf32>,
    } else {
    }
    return
  }
  func.func @transform_0(%arg0: i32, %arg1: i32) -> (i32, i32) {
    %c0_i32 = arith.constant 0 : i32
    %c0_i32_0 = arith.constant 0 : i32
    return %arg1, %c0_i32 : i32, i32
  }
  func.func @transform_1(%arg0: i32, %arg1: i32) -> (i32, i32) {
    %c0_i32 = arith.constant 0 : i32
    %c0_i32_0 = arith.constant 0 : i32
    return %arg1, %c0_i32 : i32, i32
  }
  func.func @transform_2(%arg0: i32, %arg1: i32) -> (i32, i32) {
    %c0_i32 = arith.constant 0 : i32
    %c0_i32_0 = arith.constant 0 : i32
    return %arg1, %c0_i32 : i32, i32
  }
  func.func @transform_3(%arg0: i32, %arg1: i32) -> (i32, i32) {
    %c0_i32 = arith.constant 0 : i32
    %c0_i32_0 = arith.constant 0 : i32
    %c0_i32_1 = arith.constant 0 : i32
    return %c0_i32, %c0_i32_0 : i32, i32
  }
  func.func @transform_4(%arg0: i32, %arg1: i32) -> (i32, i32) {
    %c0_i32 = arith.constant 0 : i32
    %c0_i32_0 = arith.constant 0 : i32
    %c0_i32_1 = arith.constant 0 : i32
    return %c0_i32, %c0_i32_0 : i32, i32
  }
  func.func @transform_5(%arg0: i32, %arg1: i32) -> (i32, i32) {
    %c0_i32 = arith.constant 0 : i32
    %c0_i32_0 = arith.constant 0 : i32
    %c0_i32_1 = arith.constant 0 : i32
    return %c0_i32, %c0_i32_0 : i32, i32
  }
  func.func @transform_6(%arg0: i32, %arg1: i32) -> (i32, i32) {
    %c0_i32 = arith.constant 0 : i32
    %c0_i32_0 = arith.constant 0 : i32
    %c0_i32_1 = arith.constant 0 : i32
    return %c0_i32, %c0_i32_0 : i32, i32
  }
  func.func @transform_7(%arg0: i32, %arg1: i32) -> (i32, i32) {
    %c0_i32 = arith.constant 0 : i32
    %c0_i32_0 = arith.constant 0 : i32
    %c0_i32_1 = arith.constant 0 : i32
    return %c0_i32, %c0_i32_0 : i32, i32
  }
  func.func @transform_8(%arg0: i32, %arg1: i32) -> (i32, i32) {
    %c0_i32 = arith.constant 0 : i32
    %c0_i32_0 = arith.constant 0 : i32
    %c0_i32_1 = arith.constant 0 : i32
    return %c0_i32, %c0_i32_0 : i32, i32
  }
  func.func @transform_9(%arg0: i32, %arg1: i32) -> (i32, i32) {
    %c0_i32 = arith.constant 0 : i32
    %c0_i32_0 = arith.constant 0 : i32
    %c0_i32_1 = arith.constant 0 : i32
    return %c0_i32, %c0_i32_0 : i32, i32
  }
  func.func @transform_10(%arg0: i32, %arg1: i32) -> (i32, i32) {
    %c0_i32 = arith.constant 0 : i32
    %c0_i32_0 = arith.constant 0 : i32
    return %arg1, %c0_i32 : i32, i32
  }
  func.func @transform_11(%arg0: i32, %arg1: i32) -> (i32, i32) {
    %c0_i32 = arith.constant 0 : i32
    %c0_i32_0 = arith.constant 0 : i32
    %c0_i32_1 = arith.constant 0 : i32
    return %c0_i32, %c0_i32_0 : i32, i32
  }
}

</mosaic_0001>

<bundles_post_ra>
// kernel: ggt_layer.1
= control target key start
LH: loop header
LB: loop body
LE: loop exit
PB: predicated region body
PF: predicated region fallthrough
CT: control target
= control target key end

     0   :  { %s2023_s17 = smov 0   ;;  %s2025_s18 = smov 0   ;;  %s2353_s0 = inlined_call_operand.vmem [shape: s32[96,1], index: 0, kind: input, shape index: {}]   ;;  %s2354_s1 = inlined_call_operand.vmem [shape: s32[96,1], index: 1, kind: input, shape index: {}]   ;;  %s2355_s2 = inlined_call_operand.vmem [shape: f32[96,16], index: 2, kind: input, shape index: {}]   ;;  %s2356_s3 = inlined_call_operand.vmem [shape: f32[16,32], index: 3, kind: input, shape index: {}]   ;;  %s2357_s4 = inlined_call_operand.vmem [shape: f32[32,192], index: 4, kind: input, shape index: {}]   ;;  %s2358_s5 = inlined_call_operand.vmem [shape: f32[1,192], index: 5, kind: input, shape index: {}]   ;;  %s2359_s6 = inlined_call_operand.vmem [shape: f32[16,32], index: 6, kind: input, shape index: {}]   ;;  %s2360_s7 = inlined_call_operand.vmem [shape: f32[1,32], index: 7, kind: input, shape index: {}]   ;;  %s2361_s8 = inlined_call_operand.vmem [shape: f32[1,32], index: 8, kind: input, shape index: {}]   ;;  %s2362_s9 = inlined_call_operand.vmem [shape: f32[1,32], index: 9, kind: input, shape index: {}]   ;;  %s2363_s10 = inlined_call_operand.vmem [shape: f32[96,32], index: 10, kind: output, shape index: {0}]   ;;  %s2364_s11 = inlined_call_operand.vmem [shape: f32[16,64], index: 11, kind: output, shape index: {1}]  }
   0x1   :  { %2365 = sst [smem:[#allocation7_spill]] %s2353_s0  ;;  %s2027_s19 = smov 0  }
   0x2   :  { %s2029_s20 = smov 0   ;;  %s2031_s21 = smov 0  }
   0x3 LB: > { %s31_s22 = sadd.s32 1, %s1942_s19  ;;  %s34_s23 = sadd.s32 1, %s1946_s20  ;;  %s1950_s21 = sphi %s2031_s21, %s22_s21   ;;  %s1946_s20 = sphi %s2029_s20, %s2374_s20   ;;  %s1942_s19 = sphi %s2027_s19, %s2373_s19   ;;  %s1938_s18 = sphi %s2025_s18, %s2372_s18   ;;  %s1934_s17 = sphi %s2023_s17, %s2371_s17  }
   0x4   : > { %p32_p0 = scmp.ge.s32.totalorder %s31_s22, 3  ;;  %p1659_p1 = scmp.ge.s32.totalorder %s1950_s21, 1 }
   0x5   : > { %p370_p2 = scmp.lt.s32.totalorder %s1950_s21, 7 }
   0x6   : > { %s2376_s22 = smov (%p32_p0, %s31_s22), 0  ;;  %s2378_s23 = smov (!%p32_p0, %s34_s23), %s1946_s20 }
   0x7   : > { %2366 = sst [smem:[#allocation5_spill]] %s2376_s22  ;;  %p371_p3 = pnand %p1659_p1, %p370_p2 }
   0x8   : > { %p36_p4 = scmp.ge.s32.totalorder %s2378_s23, 2  ;;  %s1660_s24 = sshll.u32 (!%p371_p3), %s1934_s17, 2 }
   0x9   : > { %374 = sbr.rel (%p371_p3) target bundleno = 2477 (0x9ad), region = 60  ;;  %p444_p5 = scmp.eq.s32.totalorder (!%p371_p3), %s1938_s18, 0 }
   0xa   : > { %s2380_s23 = smov (%p36_p4, %s2378_s23), 0  ;;  %p421_p6 = scmp.lt.s32.totalorder (!%p371_p3), %s1660_s24, 11 }
   0xb   : > { %2367 = sst [smem:[#allocation6_spill]] %s2380_s23  ;;  %p445_p7 = scmp.eq.s32.totalorder (!%p371_p3), %s1934_s17, 0 }
   0xc   : > { %s2368_s0 = sld [smem:[#allocation7_spill]] (!%p371_p3) }
   0xd   : > { %p446_p8 = pnand (!%p371_p3), %p445_p7, %p444_p5 }
  0x10   : > { %s2382_s24 = smov (!%p421_p6, %s1660_s24), 11  ;;  %449 = sbr.rel (%p446_p8) target bundleno = 403 (0x193), region = 64 }
  0x11   : > { %s1661_s25 = sshll.u32 %s2382_s24, 3  ;;  %v453_v0 = vld [vmem:[%s2357_s4 + $0x8] sm:$0xff] (!%p446_p8)  ;;  %v455_v1 = vld [vmem:[%s2357_s4 + $0x18] sm:$0xff] (!%p446_p8)  ;;  %v452_v2 = vld [vmem:[%s2357_s4] sm:$0xff] (!%p446_p8)  ;;  %vm472_vm0 = vcmask (!%p446_p8), 261120   ;;  %v1952_v7 = vmov (!%p446_p8), 0.0   ;;  %v462_v15 = vlaneseq (!%p446_p8) }
  0x12   : > { %s2065_s28 = scalar_lea.vmem %s2368_s0, %s1661_s25  ;;  %s2070_s12 = scalar_lea.vmem %s2354_s1, %s1661_s25  ;;  %v1757_v3 = vpack.c.bf16 (!%p446_p8), %v455_v1, %v453_v0  ;;  %v454_v4 = vld [vmem:[%s2357_s4 + $0x10] sm:$0xff] (!%p446_p8)  ;;  %v457_v5 = vld [vmem:[%s2357_s4 + $0x28] sm:$0xff] (!%p446_p8)  ;;  %v459_v6 = vld [vmem:[%s2357_s4 + $0x38] sm:$0xff] (!%p446_p8)  ;;  %543 = vmatprep.mubr.f32.mxu0 (!%p446_p8), %v1952_v7  ;;  %549 = vmatprep.mubr.f32.mxu1 (!%p446_p8), %v1952_v7  ;;  %640 = vst.msk [vmem:[#allocation3] sm:$0xff] (!%p446_p8), %vm472_vm0, %v1952_v7  ;;  %vm624_vm1 = vcmask (!%p446_p8), 523264   ;;  %vm627_vm2 = vcmask (!%p446_p8), 785408  }
  0x13   : > { %s2075_s15 = scalar_lea.vmem %s2355_s2, %s1661_s25  ;;  %s2080_s22 = scalar_lea.vmem %s2363_s10, %s1661_s25  ;;  %641 = vst.msk [vmem:[#allocation3 + $0x8] sm:$0xff] (!%p446_p8), %vm472_vm0, %v1952_v7  ;;  %v1759_v8 = vpack.c.bf16 (!%p446_p8), %v454_v4, %v452_v2  ;;  %v1761_v9 = vpack.c.bf16 (!%p446_p8), %v459_v6, %v457_v5  ;;  %v456_v10 = vld [vmem:[%s2357_s4 + $0x20] sm:$0xff] (!%p446_p8)  ;;  %v458_v11 = vld [vmem:[%s2357_s4 + $0x30] sm:$0xff] (!%p446_p8)  ;;  %v451_v14 = vld [vmem:[%s2356_s3 + $0x8] sm:$0xff] (!%p446_p8)  ;;  %v463_v16 = vshrl.u32 (!%p446_p8), %v462_v15, 7 }
  0x14   : > { %1758 = vmatprep.subr.bf16.mxu0 (!%p446_p8), %v1757_v3  ;;  %1793 = vmatprep.subr.bf16.mxu1 (!%p446_p8), %v1757_v3  ;;  %v1763_v12 = vpack.c.bf16 (!%p446_p8), %v458_v11, %v456_v10  ;;  %v450_v13 = vld [vmem:[%s2356_s3] sm:$0xff] (!%p446_p8)  ;;  %642 = vst.msk [vmem:[#allocation4] sm:$0xff] (!%p446_p8), %vm624_vm1, %v1952_v7  ;;  %643 = vst.msk [vmem:[#allocation4 + $0x8] sm:$0xff] (!%p446_p8), %vm624_vm1, %v1952_v7  ;;  %s1953_s24 = smov (!%p446_p8), 32   ;;  %s1954_s0 = smov (!%p446_p8), 64  }
  0x15   : > { %1760 = vmatpush1.bf16.msra.mxu0 (!%p446_p8), %v1759_v8  ;;  %1795 = vmatpush1.bf16.msra.mxu1 (!%p446_p8), %v1759_v8  ;;  %v464_v17 = vsub.s32 (!%p446_p8), 0, %v463_v16  ;;  %v460_v18 = vld [vmem:[%s2358_s5] sm:$0x3] (!%p446_p8)  ;;  %v468_v20 = vsub.s32 (!%p446_p8), 1, %v463_v16  ;;  %s1955_s26 = smov (!%p446_p8), 96  }
  0x16   : > { %1762 = vmatprep.subr.bf16.mxu0 (!%p446_p8), %v1761_v9  ;;  %1794 = vmatprep.subr.bf16.mxu1 (!%p446_p8), %v1761_v9 }
  0x17   : > { %v465_v19 = vrot.slane %v460_v18, %v464_v17  ;;  %v469_v25 = vrot.slane %v460_v18, %v468_v20 }
  0x19   : > { %1764 = vmatpush1.bf16.msra.mxu0 %v1763_v12  ;;  %1796 = vmatpush1.bf16.msra.mxu1 %v1763_v12 }
  0x1c   : > { %1668 = vmatmul.mubr.msk.f32.vlgmr.msra.gmra.mrb[0].mxu0 %vm472_vm0, %v450_v13  ;;  %1669 = vmatmul.mubr.msk.f32.vlgmr.msra.gmra.mrb[0].mxu1 %vm472_vm0, %v451_v14 }
  0xef   : > { %v545_v21 = vpop.f32.mrb[0].mxu0  ;;  %v551_v22 = vpop.f32.mrb[0].mxu1 }
  0xf0   : > { %v546_v23 = vadd.f32 %v545_v21, %v465_v19  ;;  %v552_v24 = vadd.f32 %v551_v22, %v465_v19  ;;  %v547_v26 = vpop.f32.mrb[1].mxu0  ;;  %v553_v27 = vpop.f32.mrb[1].mxu1 }
  0xf1   : > { %v554_v30 = vadd.f32 %v553_v27, %v469_v25  ;;  %v548_v32 = vadd.f32 %v547_v26, %v469_v25 }
  0xf2   : > { %1852 = vtanh.f32 %v546_v23  ;;  %v1670_v28 = vmul.f32 -1.442695, %v546_v23  ;;  %v1671_v29 = vmul.f32 -1.442695, %v552_v24  ;;  %596 = vrot.lane.b32.xlu1 %v552_v24, %s1953_s24  ;;  %580 = vrot.lane.b32.xlu0 %v546_v23, %s1954_s0 }
  0xf3   : > { %1854 = vtanh.f32 %v552_v24 }
  0xf4   : > { %1856 = vpow2.f32 %v1670_v28 }
  0xf5   : > { %1858 = vpow2.f32 %v1671_v29 }
  0xf6   : > { %604 = vrot.lane.b32.xlu1 %v554_v30, %s1954_s0  ;;  %582 = vrot.lane.b32.xlu0 %v552_v24, %s1954_s0 }
  0xfa   : > { %594 = vrot.lane.b32.xlu0 %v546_v23, %s1953_s24 }
  0xfc   : > { %v1853_v31 = vpop.eup %1852 }
  0xfd   : > { %v1855_v33 = vpop.eup %1854  ;;  %v558_v34 = vmul.f32 1.442695, %v1853_v31 }
  0xfe   : > { %v1857_v35 = vpop.eup %1856  ;;  %602 = vrot.lane.b32.xlu0 %v548_v32, %s1954_s0  ;;  %v560_v38 = vmul.f32 1.442695, %v1855_v33 }
  0xff   : > { %v1859_v36 = vpop.eup %1858  ;;  %1860 = vpow2.f32 %v558_v34  ;;  %v568_v37 = vadd.f32 1.0, %v1857_v35 }
 0x100   : > { %v569_v39 = vadd.f32 1.0, %v1859_v36 }
 0x101   : > { %1862 = vrcp.f32 %v568_v37 }
 0x102   : > { %1864 = vrcp.f32 %v569_v39 }
 0x103   : > { %1866 = vpow2.f32 %v560_v38 }
 0x109   : > { %v1861_v40 = vpop.eup %1860 }
 0x10a   : > { %588 = vrot.lane.b32.xlu1 %v1861_v40, %s1953_s24 }
 0x10b   : > { %v1863_v41 = vpop.eup %1862 }
 0x10c   : > { %v1865_v42 = vpop.eup %1864  ;;  %v574_v43 = vmul.f32 1.442695, %v1863_v41 }
 0x10d   : > { %v1867_v44 = vpop.eup %1866  ;;  %v576_v45 = vmul.f32 1.442695, %v1865_v42 }
 0x10e   : > { %1868 = vpow2.f32 %v574_v43  ;;  %590 = vrot.lane.b32.xlu1 %v1867_v44, %s1953_s24 }
 0x10f   : > { %1870 = vpow2.f32 %v576_v45 }
 0x118   : > { %v1869_v46 = vpop.eup %1868 }
 0x119   : > { %v1871_v47 = vpop.eup %1870  ;;  %610 = vrot.lane.b32.xlu0 %v1869_v46, %s1953_s24 }
 0x11a   : > { %612 = vrot.lane.b32.xlu1 %v1871_v47, %s1953_s24 }
 0x11d   : > { %616 = vrot.lane.b32.xlu0 %v548_v32, %s1955_s26 }
 0x11e   : > { %618 = vrot.lane.b32.xlu1 %v554_v30, %s1955_s26 }
 0x164   : > { %v581_v48 = vpop.permute.xlu0 %580  ;;  %v597_v49 = vpop.permute.xlu1 %596 }
 0x168   : > { %v583_v50 = vpop.permute.xlu0 %582  ;;  %v605_v51 = vpop.permute.xlu1 %604 }
 0x16c   : > { %v595_v52 = vpop.permute.xlu0 %594 }
 0x170   : > { %v603_v55 = vpop.permute.xlu0 %602 }
 0x17c   : > { %v589_v53 = vpop.permute.xlu1 %588 }
 0x17d   : > { %v622_v54 = vsel %vm472_vm0, %v581_v48, %v589_v53 }
 0x17e   : > { %v625_v56 = vsel %vm624_vm1, %v622_v54, %v595_v52 }
 0x17f   : > { %v628_v57 = vsel %vm627_vm2, %v625_v56, %v603_v55 }
 0x180   : > { %v591_v58 = vpop.permute.xlu1 %590  ;;  %636 = vst [vmem:[#allocation2] sm:$0xff] %v628_v57 }
 0x181   : > { %v623_v59 = vsel %vm472_vm0, %v583_v50, %v591_v58 }
 0x182   : > { %v626_v60 = vsel %vm624_vm1, %v623_v59, %v597_v49 }
 0x183   : > { %v629_v61 = vsel %vm627_vm2, %v626_v60, %v605_v51 }
 0x184   : > { %638 = vst [vmem:[#allocation2 + $0x10] sm:$0xff] %v629_v61 }
 0x18b   : > { %v611_v62 = vpop.permute.xlu0 %610 }
 0x18c   : > { %v630_v63 = vsel %vm472_vm0, %v595_v52, %v611_v62  ;;  %v613_v0 = vpop.permute.xlu1 %612 }
 0x18d   : > { %v631_v1 = vsel %vm472_vm0, %v597_v49, %v613_v0  ;;  %v632_v2 = vsel %vm624_vm1, %v630_v63, 0.0 }
 0x18e   : > { %v633_v4 = vsel %vm624_vm1, %v631_v1, 0.0 }
 0x18f   : > { %v617_v3 = vpop.permute.xlu0 %616 }
 0x190   : > { %v634_v5 = vsel %vm627_vm2, %v632_v2, %v617_v3  ;;  %v619_v6 = vpop.permute.xlu1 %618 }
 0x191   : > { %637 = vst [vmem:[#allocation2 + $0x8] sm:$0xff] %v634_v5  ;;  %v635_v7 = vsel %vm627_vm2, %v633_v4, %v619_v6 }
 0x192   : > { %639 = vst [vmem:[#allocation2 + $0x18] sm:$0xff] %v635_v7 }
 0x193 PF: > { %v647_v8 = vld [vmem:[%s2065_s28 + $0x8] sm:$0xff]  ;;  %v646_v9 = vld [vmem:[%s2065_s28] sm:$0xff]  ;;  %v1956_v10 = vmov 0   ;;  %v649_v12 = vld [vmem:[%s2065_s28 + $0x18] sm:$0xff]  ;;  %v1957_v17 = vmov 0.0   ;;  %v644_v27 = vlaneseq  ;;  %vm706_vm3 = vcmask 130048  }
 0x194   : > { %1873 = vset.pattern.permute.xlu1 %v1956_v10  ;;  %1872 = vset.pattern.permute.xlu0 %v1956_v10  ;;  %v674_v11 = vld [vmem:[%s2070_s12] sm:$0xff]  ;;  %v704_v16 = vld [vmem:[#allocation2 + $0x10] sm:$0xff]  ;;  %v675_v20 = vld [vmem:[%s2070_s12 + $0x8] sm:$0xff]  ;;  %vm1047_vm12 = vcmask 261120   ;;  %p1697_p9 = scmp.ne.s32.totalorder %s1938_s18, 0 }
 0x195   : > { %654 = vperm.xlu1 %1873, %v647_v8   ;;  %651 = vperm.xlu0 %1872, %v646_v9   ;;  %v702_v15 = vld [vmem:[#allocation2] sm:$0xff]  ;;  %v648_v21 = vld [vmem:[%s2065_s28 + $0x10] sm:$0xff]  ;;  %v906_v23 = vld [vmem:[%s2359_s6 + $0x8] sm:$0xff]  ;;  %v645_v28 = vand.u32 127, %v644_v27 }
 0x196   : > { %783 = vmatprep.mubr.f32.mxu0 %v1957_v17  ;;  %798 = vmatprep.mubr.f32.mxu1 %v1957_v17  ;;  %v1767_v19 = vpack.c.bf16 %v704_v16, %v702_v15  ;;  %v905_v22 = vld [vmem:[%s2359_s6] sm:$0xff]  ;;  %v677_v25 = vld [vmem:[%s2070_s12 + $0x18] sm:$0xff]  ;;  %v676_v26 = vld [vmem:[%s2070_s12 + $0x10] sm:$0xff] }
 0x197   : > { %v1773_v24 = vpack.c.bf16 %v906_v23, %v905_v22  ;;  %v901_v38 = vld [vmem:[%s2075_s15] sm:$0xff]  ;;  %v902_v42 = vld [vmem:[%s2075_s15 + $0x8] sm:$0xff]  ;;  %v903_v43 = vld [vmem:[%s2075_s15 + $0x10] sm:$0xff] }
 0x198   : > { %v703_v13 = vld [vmem:[#allocation2 + $0x8] sm:$0xff]  ;;  %v904_v46 = vld [vmem:[%s2075_s15 + $0x18] sm:$0xff]  ;;  %v1688_v60 = vld [vmem:[%s2360_s7] ss:$0 sm:$0xff] }
 0x199   : > { %v705_v14 = vld [vmem:[#allocation2 + $0x18] sm:$0xff]  ;;  %679 = vperm.xlu1 %1873, %v674_v11   ;;  %660 = vperm.xlu0 %1872, %v649_v12  }
 0x19a   : > { %v1765_v18 = vpack.c.bf16 %v705_v14, %v703_v13 }
 0x19c   : > { %1766 = vmatprep.subr.bf16.mxu0 %v1765_v18  ;;  %1797 = vmatprep.subr.bf16.mxu1 %v1765_v18 }
 0x19d   : > { %1768 = vmatpush1.bf16.msra.mxu0 %v1767_v19  ;;  %1798 = vmatpush1.bf16.msra.mxu1 %v1767_v19 }
 0x19e   : > { %1770 = vmatprep.subr.bf16.mxu1 %v1765_v18  ;;  %682 = vperm.xlu1 %1873, %v675_v20  }
 0x19f   : > { %657 = vperm.xlu0 %1872, %v648_v21   ;;  %1774 = vmatprep.subr.bf16.mxu0 %v1773_v24 }
 0x1a2   : > { %688 = vperm.xlu1 %1873, %v677_v25  }
 0x1a3   : > { %685 = vperm.xlu0 %1872, %v676_v26  }
 0x214   : > { %v655_v29 = vpop.permute.xlu1 %654  ;;  %v652_v30 = vpop.permute.xlu0 %651 }
 0x215   : > { %vm663_vm4 = vcmp.eq.s32.totalorder %v655_v29, %v645_v28  ;;  %vm662_vm5 = vcmp.eq.s32.totalorder %v652_v30, %v645_v28 }
 0x216   : > { %v1672_v31 = vsel %vm662_vm5, 1.0, %v1957_v17  ;;  %v1673_v32 = vsel %vm663_vm4, 1.0, %v1957_v17 }
 0x217   : > { %1680 = vmatmul.mubr.msk.f32.vlgmr.msra.gmra.mrb[0].mxu0 %vm706_vm3, %v1672_v31 }
 0x218   : > { %v680_v33 = vpop.permute.xlu1 %679  ;;  %v661_v34 = vpop.permute.xlu0 %660  ;;  %788 = vmatprep.mubr.f32.mxu0 %v1957_v17  ;;  %1776 = vmatpush3.bf16.msra.mxu0 %v1773_v24 }
 0x219   : > { %vm665_vm6 = vcmp.eq.s32.totalorder %v661_v34, %v645_v28  ;;  %vm690_vm7 = vcmp.eq.s32.totalorder %v680_v33, %v645_v28 }
 0x21a   : > { %v1675_v35 = vsel %vm665_vm6, 1.0, %v1957_v17  ;;  %v2166_v39 = vsel %vm690_vm7, 1.0, %v1957_v17 }
 0x21b   : > { %1681 = vmatmul.mubr.msk.f32.gmra.mrb[2].mxu0 %vm706_vm3, %v1673_v32  ;;  %1683 = vmatmul.mubr.msk.f32.vlgmr.msra.gmra.mrb[0].mxu1 %vm706_vm3, %v1675_v35 }
 0x21c   : > { %1772 = vmatpush1.bf16.msra.mxu1 %v1767_v19  ;;  %793 = vmatprep.mubr.f32.mxu0 %v1957_v17 }
 0x21d   : > { %v683_v36 = vpop.permute.xlu1 %682  ;;  %880 = vmatprep.mubr.f32.mxu1 %v1957_v17  ;;  %1057 = vxpose.xlu0.b32.start [1/4] (short) (narrow) (!%p1697_p9), %v2166_v39, 16 }
 0x21e   : > { %v658_v37 = vpop.permute.xlu0 %657  ;;  %vm691_vm9 = vcmp.eq.s32.totalorder %v683_v36, %v645_v28 }
 0x21f   : > { %vm664_vm8 = vcmp.eq.s32.totalorder %v658_v37, %v645_v28  ;;  %1684 = vmatmul.mubr.msk.f32.vlgmr.msra.gmra.mrb[2].mxu1 %vm706_vm3, %v2166_v39  ;;  %v2177_v44 = vsel %vm691_vm9, 1.0, %v1957_v17 }
 0x220   : > { %v1674_v40 = vsel %vm664_vm8, 1.0, %v1957_v17  ;;  %885 = vmatprep.mubr.f32.mxu1 %v1957_v17 }
 0x221   : > { %1682 = vmatmul.mubr.msk.f32.gmra.mrb[4].mxu0 %vm706_vm3, %v1674_v40  ;;  %v689_v45 = vpop.permute.xlu1 %688  ;;  %1058 = vxpose.xlu0.b32.cont [2/4] (short) (narrow) (!%p1697_p9), %v2177_v44, 16 }
 0x222   : > { %v686_v41 = vpop.permute.xlu0 %685  ;;  %1729 = vmatprep.mubr.msk.f32.mxu0 %vm706_vm3, %v901_v38  ;;  %vm693_vm11 = vcmp.eq.s32.totalorder %v689_v45, %v645_v28  ;;  %v1055_v45 = vld [vmem:[#allocation3] sm:$0xff] (!%p1697_p9) }
 0x223   : > { %vm692_vm10 = vcmp.eq.s32.totalorder %v686_v41, %v645_v28  ;;  %1685 = vmatmul.mubr.msk.f32.gmra.mrb[4].mxu1 %vm706_vm3, %v2177_v44  ;;  %v2193_v48 = vsel %vm693_vm11, 1.0, %v1957_v17 }
 0x224   : > { %890 = vmatprep.mubr.f32.mxu1 %v1957_v17  ;;  %v2186_v47 = vsel %vm692_vm10, 1.0, %v1957_v17 }
 0x225   : > { %1730 = vmatmul.mubr.msk.f32.vlgmr.msra.gmra.mrb[6].mxu0 %vm706_vm3, %v902_v42  ;;  %1059 = vxpose.xlu0.b32.cont [3/4] (short) (narrow) (!%p1697_p9), %v2186_v47, 16 }
 0x226   : > { %1732 = vmatprep.mubr.msk.f32.mxu0 %vm706_vm3, %v903_v43  ;;  %v1056_v43 = vld [vmem:[#allocation3 + $0x8] sm:$0xff] (!%p1697_p9) }
 0x227   : > { %1686 = vmatmul.mubr.msk.f32.gmra.mrb[6].mxu1 %vm706_vm3, %v2186_v47 }
 0x228   : > { %895 = vmatprep.mubr.f32.mxu1 %v1957_v17 }
 0x229   : > { %1733 = vmatmul.mubr.msk.f32.gmra.mrb[8].mxu0 %vm706_vm3, %v904_v46  ;;  %1060 = vxpose.xlu0.b32.end [4/4] (short) (narrow) (!%p1697_p9), %v2193_v48, 16 }
 0x22b   : > { %1687 = vmatmul.mubr.msk.f32.gmra.mrb[8].mxu1 %vm706_vm3, %v2193_v48 }
 0x29d   : > { %v1073_v41 = vpop.trf.xlu0 (!%p1697_p9) }
 0x29e   : > { %1743 = vmatprep.mubr.msk.f32.mxu0 (!%p1697_p9), %vm1047_vm12, %v1073_v41 }
 0x2a1   : > { %v1074_v42 = vpop.trf.xlu0 (!%p1697_p9) }
 0x2ea   : > { %v2197_v49 = vpop.f32.mrb[0].mxu0 }
 0x2eb   : > { %v787_v50 = vpop.f32.mrb[1].mxu0 }
 0x2ee   : > { %v2199_v51 = vpop.f32.mrb[2].mxu0  ;;  %v2201_v52 = vpop.f32.mrb[0].mxu1 }
 0x2ef   : > { %v792_v53 = vpop.f32.mrb[3].mxu0  ;;  %v802_v54 = vpop.f32.mrb[1].mxu1 }
 0x2f2   : > { %v882_v56 = vpop.f32.mrb[2].mxu1 }
 0x2f3   : > { %v2205_v58 = vpop.f32.mrb[3].mxu1 }
 0x2f4   : > { %v2203_v55 = vpop.f32.mrb[4].mxu0  ;;  %v1011_v59 = vadd.f32 %v2205_v58, %v2197_v49 }
 0x2f5   : > { %v797_v57 = vpop.f32.mrb[5].mxu0 }
 0x2f6   : > { %v887_v61 = vpop.f32.mrb[4].mxu1 }
 0x2f7   : > { %v2212_v0 = vpop.f32.mrb[5].mxu1 }
 0x2f8   : > { %v1731_v62 = vpop.f32.mrb[6].mxu0  ;;  %v1012_v2 = vadd.f32 %v2212_v0, %v2199_v51 }
 0x2f9   : > { %v998_v63 = vadd.f32 %v1731_v62, %v1688_v60  ;;  %v992_v1 = vpop.f32.mrb[7].mxu0 }
 0x2fa   : > { %v993_v3 = vadd.f32 %v1688_v60, %v992_v1  ;;  %v892_v6 = vpop.f32.mrb[6].mxu1 }
 0x2fb   : > { %v1016_v4 = vadd.f32 %v1012_v2, %v998_v63  ;;  %v2216_v8 = vpop.f32.mrb[7].mxu1 }
 0x2fc   : > { %v1015_v5 = vadd.f32 %v1011_v59, %v993_v3  ;;  %v1734_v7 = vpop.f32.mrb[8].mxu0  ;;  %v1013_v14 = vadd.f32 %v2216_v8, %v2203_v55 }
 0x2fd   : > { %v1002_v9 = vpop.f32.mrb[9].mxu0  ;;  %v1694_v10 = vmul.f32 -1.442695, %v1016_v4  ;;  %v1044_v11 = vmax.f32 %v1016_v4, 0.0  ;;  %v1008_v16 = vadd.f32 %v1734_v7, %v1688_v60 }
 0x2fe   : > { %v1693_v12 = vmul.f32 -1.442695, %v1015_v5  ;;  %v1043_v13 = vmax.f32 %v1015_v5, 0.0  ;;  %v1003_v15 = vadd.f32 %v1688_v60, %v1002_v9  ;;  %v897_v17 = vpop.f32.mrb[8].mxu1 }
 0x2ff   : > { %1874 = vpow2.f32 %v1694_v10  ;;  %1049 = vst.msk [vmem:[%s2080_s22 + $0x8] sm:$0xff] %vm1047_vm12, %v1044_v11  ;;  %v2224_v19 = vpop.f32.mrb[9].mxu1 }
 0x300   : > { %1048 = vst.msk [vmem:[%s2080_s22] sm:$0xff] %vm1047_vm12, %v1043_v13  ;;  %1876 = vpow2.f32 %v1693_v12  ;;  %v1017_v18 = vadd.f32 %v1013_v14, %v1003_v15  ;;  %v1014_v20 = vadd.f32 %v2224_v19, %v2201_v52 }
 0x302   : > { %v1695_v21 = vmul.f32 -1.442695, %v1017_v18  ;;  %v1045_v22 = vmax.f32 %v1017_v18, 0.0  ;;  %v1018_v23 = vadd.f32 %v1014_v20, %v1008_v16 }
 0x304   : > { %1878 = vpow2.f32 %v1695_v21  ;;  %1050 = vst.msk [vmem:[%s2080_s22 + $0x10] sm:$0xff] %vm1047_vm12, %v1045_v22  ;;  %v1696_v24 = vmul.f32 -1.442695, %v1018_v23  ;;  %v1046_v25 = vmax.f32 %v1018_v23, 0.0 }
 0x306   : > { %1880 = vpow2.f32 %v1696_v24  ;;  %1051 = vst.msk [vmem:[%s2080_s22 + $0x18] sm:$0xff] %vm1047_vm12, %v1046_v25 }
 0x309   : > { %v1875_v26 = vpop.eup %1874 }
 0x30a   : > { %v1877_v27 = vpop.eup %1876  ;;  %v1032_v28 = vadd.f32 1.0, %v1875_v26 }
 0x30b   : > { %v1031_v29 = vadd.f32 1.0, %v1877_v27 }
 0x30c   : > { %1882 = vrcp.f32 %v1032_v28 }
 0x30d   : > { %1884 = vrcp.f32 %v1031_v29 }
 0x30e   : > { %v1879_v30 = vpop.eup %1878 }
 0x30f   : > { %v1033_v31 = vadd.f32 1.0, %v1879_v30 }
 0x310   : > { %v1881_v32 = vpop.eup %1880 }
 0x311   : > { %1886 = vrcp.f32 %v1033_v31  ;;  %v1034_v33 = vadd.f32 1.0, %v1881_v32 }
 0x313   : > { %1888 = vrcp.f32 %v1034_v33 }
 0x316   : > { %v2232_v34 = vpop.eup %1882 }
 0x317   : > { %v2234_v35 = vpop.eup %1884  ;;  %1054 = sbr.rel (%p1697_p9) target bundleno = 1020 (0x3fc), region = 68 }
 0x318   : > { %v1777_v38 = vpack.c.bf16 (!%p1697_p9), %v2232_v34, %v2234_v35 }
 0x31a   : > { %1778 = vmatprep.subr.bf16.mxu0 (!%p1697_p9), %v1777_v38 }
 0x31b   : > { %v2236_v36 = vpop.eup %1886  ;;  %1780 = vmatpush3.bf16.msra.mxu0 (!%p1697_p9), %v1777_v38 }
 0x31d   : > { %v2238_v37 = vpop.eup %1888 }
 0x31e   : > { %v1781_v40 = vpack.c.bf16 %v2238_v37, %v2236_v36 }
 0x320   : > { %1782 = vmatprep.subr.bf16.mxu0 %v1781_v40 }
 0x321   : > { %1784 = vmatpush3.bf16.msra.mxu0 %v1781_v40 }
 0x324   : > { %1744 = vmatmul.mubr.msk.f32.vlgmr.msra.gmra.mrb[0].mxu0 %vm1047_vm12, %v1074_v42 }
 0x3f7   : > { %v1745_v46 = vpop.f32.mrb[0].mxu0 }
 0x3f8   : > { %v1171_v50 = vadd.f32 %v1745_v46, %v1056_v43  ;;  %v1161_v53 = vpop.f32.mrb[1].mxu0 }
 0x3f9   : > { %v1170_v54 = vadd.f32 %v1161_v53, %v1055_v45 }
 0x3fa   : > { %1173 = vst.msk [vmem:[#allocation3 + $0x8] sm:$0xff] %vm1047_vm12, %v1171_v50 }
 0x3fb   : > { %1172 = vst.msk [vmem:[#allocation3] sm:$0xff] %vm1047_vm12, %v1170_v54 }
 0x3fc PF: > { %p1174_p10 = scmp.eq.s32.totalorder %s1934_s17, 2 }
 0x3fe   : > { %p1175_p11 = pnand %p1174_p10, %p444_p5 }
 0x3ff   : > { %s1958_s22 = smov (!%p1175_p11), 64   ;;  %v1188_v63 = vld [vmem:[#allocation2 + $0x8] sm:$0xff] (!%p1175_p11)  ;;  %vm1199_vm13 = vcmask (!%p1175_p11), 523264   ;;  %vm1202_vm14 = vcmask (!%p1175_p11), 785408   ;;  %v1190_v4 = vld [vmem:[#allocation2 + $0x18] sm:$0xff] (!%p1175_p11) }
 0x400   : > { %1178 = sbr.rel (%p1175_p11) target bundleno = 1162 (0x48a), region = 72 }
 0x401   : > { %v1180_v57 = vld [vmem:[#allocation3 + $0x8] sm:$0xff] (!%p1175_p11) }
 0x402   : > { %v1179_v56 = vld [vmem:[#allocation3] sm:$0xff] (!%p1175_p11)  ;;  %v1182_v60 = vadd.f32 (!%p1175_p11), 1e-12, %v1180_v57 }
 0x403   : > { %v1181_v59 = vadd.f32 (!%p1175_p11), 1e-12, %v1179_v56 }
 0x405   : > { %1890 = vrcp.f32 (!%p1175_p11), %v1181_v59 }
 0x406   : > { %1892 = vrcp.f32 (!%p1175_p11), %v1182_v60 }
 0x40f   : > { %v1891_v61 = vpop.eup %1890 }
 0x410   : > { %1193 = vrot.lane.b32.xlu0 %v1891_v61, %s1958_s22  ;;  %v1893_v62 = vpop.eup %1892 }
 0x414   : > { %1195 = vrot.lane.b32.xlu0 %v1893_v62, %s1958_s22 }
 0x482   : > { %v1194_v1 = vpop.permute.xlu0 %1193 }
 0x483   : > { %v1200_v2 = vsel %vm1199_vm13, %v1188_v63, %v1194_v1 }
 0x484   : > { %v1203_v3 = vsel %vm1202_vm14, %v1200_v2, %v1188_v63 }
 0x485   : > { %1206 = vst [vmem:[#allocation2 + $0x8] sm:$0xff] %v1203_v3 }
 0x486   : > { %v1196_v5 = vpop.permute.xlu0 %1195 }
 0x487   : > { %v1201_v6 = vsel %vm1199_vm13, %v1190_v4, %v1196_v5 }
 0x488   : > { %v1204_v7 = vsel %vm1202_vm14, %v1201_v6, %v1190_v4 }
 0x489   : > { %1208 = vst [vmem:[#allocation2 + $0x18] sm:$0xff] %v1204_v7 }
 0x48a PF: > { %p1209_p12 = scmp.eq.s32.totalorder %s1938_s18, 1  ;;  %p1700_p13 = scmp.ne.s32.totalorder %s1938_s18, 1 }
 0x48b   : > { %v1233_v9 = vmul.f32 (!%p1700_p13), %v2205_v58, %v2197_v49  ;;  %v1235_v10 = vmul.f32 (!%p1700_p13), %v2216_v8, %v2203_v55  ;;  %s1959_s15 = smov (!%p1700_p13), 96   ;;  %v1234_v11 = vmul.f32 (!%p1700_p13), %v2212_v0, %v2199_v51  ;;  %v1236_v12 = vmul.f32 (!%p1700_p13), %v2224_v19, %v2201_v52  ;;  %s1960_s14 = smov (!%p1700_p13), 64   ;;  %v1326_v4 = vld [vmem:[#allocation4 + $0x8] sm:$0xff] (!%p1700_p13)  ;;  %v1325_v5 = vld [vmem:[#allocation4] sm:$0xff] (!%p1700_p13) }
 0x48c   : > { %1212 = sbr.rel (%p1700_p13) target bundleno = 1683 (0x693), region = 76  ;;  %s1961_s23 = smov (!%p1700_p13), 32   ;;  %vm1442_vm15 = vcmask (!%p1700_p13), 523264  }
 0x48d   : > { %1241 = vrot.lane.b32.xlu0 (!%p1700_p13), %v1233_v9, %s1959_s15  ;;  %1245 = vrot.lane.b32.xlu1 (!%p1700_p13), %v1235_v10, %s1959_s15 }
 0x491   : > { %1243 = vrot.lane.b32.xlu0 (!%p1700_p13), %v1234_v11, %s1959_s15  ;;  %1247 = vrot.lane.b32.xlu1 (!%p1700_p13), %v1236_v12, %s1959_s15 }
 0x495   : > { %1219 = vrot.lane.b32.xlu1 %v2212_v0, %s1960_s14  ;;  %1217 = vrot.lane.b32.xlu0 %v2205_v58, %s1960_s14 }
 0x499   : > { %1291 = vrot.lane.b32.xlu1 %v2199_v51, %s1961_s23  ;;  %1289 = vrot.lane.b32.xlu0 %v2197_v49, %s1961_s23 }
 0x49d   : > { %1223 = vrot.lane.b32.xlu1 %v2224_v19, %s1960_s14  ;;  %1221 = vrot.lane.b32.xlu0 %v2216_v8, %s1960_s14 }
 0x4a1   : > { %1295 = vrot.lane.b32.xlu1 %v2201_v52, %s1961_s23  ;;  %1293 = vrot.lane.b32.xlu0 %v2203_v55, %s1961_s23 }
 0x4a5   : > { %1273 = vrot.lane.b32.xlu1 %v2197_v49, %s1960_s14  ;;  %1275 = vrot.lane.b32.xlu0 %v2199_v51, %s1960_s14 }
 0x4a9   : > { %1277 = vrot.lane.b32.xlu1 %v2203_v55, %s1960_s14  ;;  %1279 = vrot.lane.b32.xlu0 %v2201_v52, %s1960_s14 }
 0x4ff   : > { %v1242_v58 = vpop.permute.xlu0 %1241  ;;  %v1246_v0 = vpop.permute.xlu1 %1245 }
 0x500   : > { %v1253_v13 = vsel %vm1047_vm12, %v1242_v58, 0.0  ;;  %v1259_v8 = vsel %vm1047_vm12, %v1246_v0, 0.0 }
 0x501   : > { %1254 = vadd.xlane.f32.xlu0 %v1253_v13 }
 0x503   : > { %v1244_v14 = vpop.permute.xlu0 %1243  ;;  %v1248_v15 = vpop.permute.xlu1 %1247 }
 0x504   : > { %v1256_v16 = vsel %vm1047_vm12, %v1244_v14, 0.0  ;;  %v1262_v49 = vsel %vm1047_vm12, %v1248_v15, 0.0 }
 0x505   : > { %1257 = vadd.xlane.f32.xlu1 %v1256_v16  ;;  %1260 = vadd.xlane.f32.xlu0 %v1259_v8 }
 0x507   : > { %v1220_v51 = vpop.permute.xlu1 %1219  ;;  %v1218_v17 = vpop.permute.xlu0 %1217 }
 0x508   : > { %v1230_v52 = vmul.f32 %v2232_v34, %v1220_v51  ;;  %v1229_v55 = vmul.f32 %v2234_v35, %v1218_v17 }
 0x509   : > { %1263 = vadd.xlane.f32.xlu0 %v1262_v49 }
 0x50b   : > { %v1292_v18 = vpop.permute.xlu1 %1291  ;;  %v1290_v19 = vpop.permute.xlu0 %1289 }
 0x50c   : > { %v1302_v20 = vmul.f32 %v1292_v18, %v1230_v52  ;;  %v1301_v21 = vmul.f32 %v1290_v19, %v1229_v55 }
 0x50e   : > { %v1894_v26 = vpack.i.bf16 %v1302_v20, %v1301_v21 }
 0x50f   : > { %v1224_v22 = vpop.permute.xlu1 %1223  ;;  %v1222_v23 = vpop.permute.xlu0 %1221 }
 0x510   : > { %v1232_v24 = vmul.f32 %v2238_v37, %v1224_v22  ;;  %v1231_v25 = vmul.f32 %v2236_v36, %v1222_v23 }
 0x513   : > { %v1296_v27 = vpop.permute.xlu1 %1295  ;;  %v1294_v28 = vpop.permute.xlu0 %1293 }
 0x514   : > { %v1304_v29 = vmul.f32 %v1296_v27, %v1232_v24  ;;  %v1303_v30 = vmul.f32 %v1294_v28, %v1231_v25 }
 0x516   : > { %v1899_v31 = vpack.i.bf16 %v1304_v29, %v1303_v30  ;;  %1895 = vrot.lane.b32.xlu1 %v1894_v26, %s1961_s23 }
 0x517   : > { %v1276_v32 = vpop.permute.xlu0 %1275  ;;  %v1274_v33 = vpop.permute.xlu1 %1273 }
 0x51a   : > { %1900 = vrot.lane.b32.xlu1 %v1899_v31, %s1961_s23 }
 0x51b   : > { %v1280_v34 = vpop.permute.xlu0 %1279  ;;  %v1278_v35 = vpop.permute.xlu1 %1277 }
 0x536   : > { %1327 = vxpose.xlu0.b32.start [1/4] (short) (narrow) %v2166_v39, 16 }
 0x53a   : > { %1328 = vxpose.xlu0.b32.cont [2/4] (short) (narrow) %v2177_v44, 16 }
 0x53e   : > { %1329 = vxpose.xlu0.b32.cont [3/4] (short) (narrow) %v2186_v47, 16 }
 0x542   : > { %1330 = vxpose.xlu0.b32.end [4/4] (short) (narrow) %v2193_v48, 16 }
 0x58e   : > { %v1255_v36 = vpop.xlane.xlu0 %1254 }
 0x58f   : > { %v1265_v37 = vmul.f32 %v1255_v36, %v1229_v55 }
 0x591   : > { %v1285_v42 = vmul.f32 %v1274_v33, %v1265_v37 }
 0x592   : > { %v1258_v38 = vpop.xlane.xlu1 %1257  ;;  %v1261_v40 = vpop.xlane.xlu0 %1260 }
 0x593   : > { %v1266_v41 = vmul.f32 %v1258_v38, %v1230_v52  ;;  %v1267_v43 = vmul.f32 %v1261_v40, %v1231_v25 }
 0x595   : > { %v1286_v39 = vmul.f32 %v1276_v32, %v1266_v41  ;;  %v1287_v57 = vmul.f32 %v1278_v35, %v1267_v43 }
 0x596   : > { %v1896_v45 = vpop.permute.xlu1 %1895  ;;  %v1264_v46 = vpop.xlane.xlu0 %1263 }
 0x597   : > { %v1898_v50 = vunpack.i.h.bf16 %v1896_v45  ;;  %v1897_v44 = vunpack.i.l.bf16 %v1896_v45  ;;  %v1268_v53 = vmul.f32 %v1264_v46, %v1232_v24 }
 0x599   : > { %v1321_v47 = vsel %vm1047_vm12, %v1285_v42, %v1897_v44  ;;  %v1322_v48 = vsel %vm1047_vm12, %v1286_v39, %v1898_v50  ;;  %v1288_v59 = vmul.f32 %v1280_v34, %v1268_v53 }
 0x59a   : > { %v1901_v54 = vpop.permute.xlu1 %1900  ;;  %v1785_v56 = vpack.c.bf16 %v1322_v48, %v1321_v47 }
 0x59b   : > { %v1903_v60 = vunpack.i.h.bf16 %v1901_v54  ;;  %v1902_v61 = vunpack.i.l.bf16 %v1901_v54 }
 0x59c   : > { %1786 = vmatprep.subr.bf16.mxu0 %v1785_v56 }
 0x59d   : > { %v1323_v62 = vsel %vm1047_vm12, %v1287_v57, %v1902_v61  ;;  %v1324_v63 = vsel %vm1047_vm12, %v1288_v59, %v1903_v60  ;;  %1788 = vmatpush3.bf16.msra.mxu0 %v1785_v56 }
 0x59e   : > { %v1789_v1 = vpack.c.bf16 %v1324_v63, %v1323_v62 }
 0x5a0   : > { %1790 = vmatprep.subr.bf16.mxu0 %v1789_v1 }
 0x5a1   : > { %1792 = vmatpush3.bf16.msra.mxu0 %v1789_v1 }
 0x5b6   : > { %v1343_v2 = vpop.trf.xlu0 }
 0x5b7   : > { %1754 = vmatprep.mubr.msk.f32.mxu0 %vm1047_vm12, %v1343_v2 }
 0x5ba   : > { %v1344_v3 = vpop.trf.xlu0 }
 0x5bb   : > { %1755 = vmatmul.mubr.msk.f32.vlgmr.msra.gmra.mrb[0].mxu0 %vm1047_vm12, %v1344_v3 }
 0x68e   : > { %v1756_v6 = vpop.f32.mrb[0].mxu0 }
 0x68f   : > { %v1441_v7 = vadd.f32 %v1756_v6, %v1326_v4  ;;  %v1431_v9 = vpop.f32.mrb[1].mxu0 }
 0x690   : > { %v1440_v10 = vadd.f32 %v1431_v9, %v1325_v5 }
 0x691   : > { %1444 = vst.msk [vmem:[#allocation4 + $0x8] sm:$0xff] %vm1442_vm15, %v1441_v7 }
 0x692   : > { %1443 = vst.msk [vmem:[#allocation4] sm:$0xff] %vm1442_vm15, %v1440_v10 }
 0x693 PF: > { %p1445_p0 = pnand %p1209_p12, %p1174_p10 }
 0x694   : > { %s1962_s25 = smov (!%p1445_p0), 64   ;;  %v1449_v58 = vld [vmem:[#allocation2] sm:$0xff] (!%p1445_p0)  ;;  %v1451_v8 = vld [vmem:[#allocation2 + $0x10] sm:$0xff] (!%p1445_p0)  ;;  %v1450_v38 = vld [vmem:[#allocation2 + $0x8] sm:$0xff] (!%p1445_p0)  ;;  %vm1554_vm0 = vcmask (!%p1445_p0), 523264  }
 0x695   : > { %1448 = sbr.rel (%p1445_p0) target bundleno = 2477 (0x9ad), region = 80  ;;  %v1704_v30 = vld [vmem:[%s2362_s9] ss:$0 sm:$0xff] (!%p1445_p0)  ;;  %v1452_v41 = vld [vmem:[#allocation2 + $0x18] sm:$0xff] (!%p1445_p0) }
 0x696   : > { %v1703_v31 = vld [vmem:[%s2361_s8] ss:$0 sm:$0xff] (!%p1445_p0) }
 0x698   : > { %v1454_v12 = vld [vmem:[#allocation4 + $0x8] sm:$0xff] (!%p1445_p0) }
 0x699   : > { %v1453_v11 = vld [vmem:[#allocation4] sm:$0xff] (!%p1445_p0) }
 0x69a   : > { %1457 = vrot.lane.b32.xlu0 (!%p1445_p0), %v1453_v11, %s1962_s25 }
 0x69e   : > { %1459 = vrot.lane.b32.xlu0 %v1454_v12, %s1962_s25 }
 0x70c   : > { %v1458_v0 = vpop.permute.xlu0 %1457 }
 0x70d   : > { %v1463_v13 = vadd.f32 %v1458_v0, %v1449_v58  ;;  %v1532_v40 = vadd.f32 %v1458_v0, %v1450_v38 }
 0x70f   : > { %v1465_v14 = vmax.f32 %v1463_v13, 0.0 }
 0x710   : > { %v1460_v15 = vpop.permute.xlu0 %1459 }
 0x711   : > { %v1464_v16 = vadd.f32 %v1460_v15, %v1451_v8  ;;  %1469 = vrot.lane.b32.xlu1 %v1465_v14, %s1962_s25  ;;  %v1533_v43 = vadd.f32 %v1460_v15, %v1452_v41 }
 0x713   : > { %v1466_v49 = vmax.f32 %v1464_v16, 0.0 }
 0x715   : > { %1471 = vrot.lane.b32.xlu1 %v1466_v49, %s1962_s25 }
 0x783   : > { %v1470_v51 = vpop.permute.xlu1 %1469 }
 0x784   : > { %v1475_v17 = vsel %vm1047_vm12, %v1470_v51, 0.0 }
 0x785   : > { %1476 = vadd.xlane.f32.xlu0 %v1475_v17 }
 0x787   : > { %v1472_v52 = vpop.permute.xlu1 %1471 }
 0x788   : > { %v1478_v55 = vsel %vm1047_vm12, %v1472_v52, 0.0 }
 0x789   : > { %1479 = vadd.xlane.f32.xlu1 %v1478_v55 }
 0x812   : > { %v1477_v18 = vpop.xlane.xlu0 %1476 }
 0x813   : > { %v1482_v19 = vmul.f32 0.03125, %v1477_v18 }
 0x815   : > { %v1484_v20 = vsub.f32 %v1465_v14, %v1482_v19 }
 0x816   : > { %v1480_v21 = vpop.xlane.xlu1 %1479 }
 0x817   : > { %v1483_v22 = vmul.f32 0.03125, %v1480_v21  ;;  %v1486_v23 = vmul.f32 %v1484_v20, %v1484_v20 }
 0x819   : > { %v1485_v24 = vsub.f32 %v1466_v49, %v1483_v22  ;;  %1490 = vrot.lane.b32.xlu0 %v1486_v23, %s1962_s25 }
 0x81b   : > { %v1487_v25 = vmul.f32 %v1485_v24, %v1485_v24 }
 0x81d   : > { %1492 = vrot.lane.b32.xlu1 %v1487_v25, %s1962_s25 }
 0x88b   : > { %v1491_v26 = vpop.permute.xlu0 %1490 }
 0x88c   : > { %v1496_v27 = vsel %vm1047_vm12, %v1491_v26, 0.0 }
 0x88d   : > { %1497 = vadd.xlane.f32.xlu0 %v1496_v27 }
 0x88f   : > { %v1493_v28 = vpop.permute.xlu1 %1492 }
 0x890   : > { %v1499_v29 = vsel %vm1047_vm12, %v1493_v28, 0.0 }
 0x891   : > { %1500 = vadd.xlane.f32.xlu1 %v1499_v29 }
 0x8a2   : > { %1527 = vrot.lane.b32.xlu1 %v1704_v30, %s1962_s25 }
 0x8a3   : > { %1516 = vrot.lane.b32.xlu0 %v1703_v31, %s1962_s25 }
 0x91a   : > { %v1498_v32 = vpop.xlane.xlu0 %1497 }
 0x91b   : > { %v1502_v33 = vmul.f32 0.03125, %v1498_v32 }
 0x91d   : > { %v1504_v34 = vadd.f32 1e-05, %v1502_v33 }
 0x91e   : > { %v1501_v35 = vpop.xlane.xlu1 %1500  ;;  %v1517_v45 = vpop.permute.xlu0 %1516 }
 0x91f   : > { %1904 = vrsqrt.f32 %v1504_v34  ;;  %v1503_v36 = vmul.f32 0.03125, %v1501_v35 }
 0x921   : > { %v1505_v37 = vadd.f32 1e-05, %v1503_v36 }
 0x922   : > { %v1528_v39 = vpop.permute.xlu1 %1527 }
 0x923   : > { %1906 = vrsqrt.f32 %v1505_v37 }
 0x924   : > { %1908 = vtanh.f32 %v1532_v40 }
 0x925   : > { %1910 = vtanh.f32 %v1533_v43 }
 0x929   : > { %v1905_v42 = vpop.eup %1904 }
 0x92a   : > { %v1508_v46 = vmul.f32 %v1905_v42, %v1484_v20 }
 0x92c   : > { %v1519_v50 = vmul.f32 %v1517_v45, %v1508_v46 }
 0x92d   : > { %v1907_v44 = vpop.eup %1906 }
 0x92e   : > { %v1509_v53 = vmul.f32 %v1907_v44, %v1485_v24  ;;  %v1530_v47 = vadd.f32 %v1528_v39, %v1519_v50  ;;  %v1909_v56 = vpop.eup %1908 }
 0x92f   : > { %v1911_v57 = vpop.eup %1910 }
 0x930   : > { %v1520_v48 = vmul.f32 %v1517_v45, %v1509_v53  ;;  %1538 = vrot.lane.b32.xlu0 %v1530_v47, %s1962_s25 }
 0x932   : > { %v1531_v54 = vadd.f32 %v1528_v39, %v1520_v48 }
 0x934   : > { %1540 = vrot.lane.b32.xlu1 %v1531_v54, %s1962_s25  ;;  %1546 = vrot.lane.b32.xlu0 %v1909_v56, %s1962_s25 }
 0x938   : > { %1548 = vrot.lane.b32.xlu1 %v1911_v57, %s1962_s25 }
 0x9a2   : > { %v1539_v59 = vpop.permute.xlu0 %1538 }
 0x9a6   : > { %v1541_v60 = vpop.permute.xlu1 %1540  ;;  %v1547_v61 = vpop.permute.xlu0 %1546 }
 0x9a7   : > { %v1552_v62 = vsel %vm1047_vm12, %v1539_v59, %v1547_v61 }
 0x9a8   : > { %1555 = vst.msk [vmem:[%s2364_s11] sm:$0xff] %vm1554_vm0, %v1552_v62 }
 0x9aa   : > { %v1549_v63 = vpop.permute.xlu1 %1548 }
 0x9ab   : > { %v1553_v1 = vsel %vm1047_vm12, %v1541_v60, %v1549_v63 }
 0x9ac   : > { %1556 = vst.msk [vmem:[%s2364_s11 + $0x8] sm:$0xff] %vm1554_vm0, %v1553_v1 }
 0x9ad PF: > { %s22_s21 = sadd.s32 1, %s1950_s21   ;;  %s2369_s30 = sld [smem:[#allocation5_spill]] }
 0x9ae   : > { %p19_p1 = scmp.ge.s32.totalorder %s22_s21, 8   ;;  %s2370_s13 = sld [smem:[#allocation6_spill]] }
 0x9af   : > { %s2371_s17 = smov %s1942_s19  ;;  %s2372_s18 = smov %s1946_s20 }
 0x9b0   :  { %21 = sbr.rel (!%p19_p1) target bundleno = 3 (0x3), region = 124 }
 0x9b3   : > { %s2373_s19 = smov %s2369_s30 }
 0x9b4   : > { %s2374_s20 = smov %s2370_s13 }

</bundles_post_ra>
